<compile_context>
chip_gen: v6e
topology: v6e:2x2x1
jax: 0.10.0
libtpu: 0.0.40
codegen_flags: <defaults>
</compile_context>

<pallas_src>
import jax
import jax.numpy as jnp
from jax.experimental import pallas as pl
from jax.experimental.pallas import tpu as pltpu

EMBEDDING_DIM = 128


def _round_up(x, m):
    return ((x + m - 1) // m) * m


def _embed_gather_kernel(ids_ref, pos_ref, tok_hbm, out_ref, tok_buf, sems):
    # ids_ref : (B * S_pad,) int32 in SMEM (scalar prefetch)
    # pos_ref : (TILE_S, E) f32 VMEM slice of the positional table
    # tok_hbm : (vocab, E) f32 token table left in HBM (memory_space=pl.ANY)
    # out_ref : (1, TILE_S, E) f32 VMEM output block
    # tok_buf : (TILE_S, E) f32 VMEM scratch (gather destination)
    # sems    : (TILE_S,) DMA semaphores
    b = pl.program_id(0)
    s = pl.program_id(1)
    tile = tok_buf.shape[0]
    vocab = tok_hbm.shape[0]
    base = (b * pl.num_programs(1) + s) * tile

    # Issue all per-row gather DMAs first so they overlap each other, then wait.
    @pl.loop(0, tile)
    def _issue(r):
        tok_id = ids_ref[base + r]
        # Clamp for memory safety only (PyTorch nn.Embedding raises on OOB ids).
        tok_id = jnp.clip(tok_id, 0, vocab - 1)
        pltpu.make_async_copy(tok_hbm.at[pl.ds(tok_id, 1), :],
                              tok_buf.at[pl.ds(r, 1), :],
                              sems.at[r]).start()

    @pl.loop(0, tile)
    def _wait(r):
        pltpu.make_async_copy(tok_hbm.at[pl.ds(0, 1), :],
                              tok_buf.at[pl.ds(r, 1), :],
                              sems.at[r]).wait()

    out_ref[...] = (tok_buf[...] + pos_ref[...])[None, :, :].astype(out_ref.dtype)


def input_embedding(token_input_ids, token_table, posit_table, *, max_tile=256):
    """token_input_ids: (B, S) int32
       token_table:     (vocab_size, EMBEDDING_DIM) float32
       posit_table:     (max_seq_length, EMBEDDING_DIM) float32
       returns:         (B, S, EMBEDDING_DIM) float32
    """
    B, S = token_input_ids.shape
    vocab, E = token_table.shape
    max_seq = posit_table.shape[0]
    assert E == EMBEDDING_DIM and posit_table.shape[1] == EMBEDDING_DIM
    assert S <= max_seq, "sequence length exceeds positional embedding table"
    assert max_tile % 8 == 0

    # Row tile along S: either the full (possibly non-multiple-of-8) sequence, or a
    # multiple-of-8 tile capped at `max_tile` so the output store stays a full
    # lane-dense (TILE_S, 128) slab and scratch / outstanding-DMA count stay modest.
    if S <= max_tile:
        tile_s = S
        s_pad = S
    else:
        tile_s = max_tile
        s_pad = _round_up(S, tile_s)
    num_s_tiles = s_pad // tile_s

    ids = token_input_ids.astype(jnp.int32)
    pos_used = posit_table[:S]
    if s_pad != S:
        ids = jnp.pad(ids, ((0, 0), (0, s_pad - S)))          # padded rows gather row 0
        pos_used = jnp.pad(pos_used, ((0, s_pad - S), (0, 0)))  # and add zeros; sliced off
    flat_ids = ids.reshape(B * s_pad)

    out = pl.pallas_call(
        _embed_gather_kernel,
        out_shape=jax.ShapeDtypeStruct((B, s_pad, E), token_table.dtype),
        grid_spec=pltpu.PrefetchScalarGridSpec(
            num_scalar_prefetch=1,
            grid=(B, num_s_tiles),
            in_specs=[
                # Positional rows come straight from a BlockSpec slice (no matmul).
                pl.BlockSpec((tile_s, E), lambda b, s, ids: (s, 0)),
                # Token table stays in HBM; rows are gathered by manual DMA.
                pl.BlockSpec(memory_space=pl.ANY),
            ],
            out_specs=pl.BlockSpec((1, tile_s, E), lambda b, s, ids: (b, s, 0)),
            scratch_shapes=[
                pltpu.VMEM((tile_s, E), token_table.dtype),
                pltpu.SemaphoreType.DMA((tile_s,)),
            ],
        ),
        compiler_params=pltpu.CompilerParams(
            dimension_semantics=("parallel", "parallel")),
    )(flat_ids, pos_used, token_table)

    if s_pad != S:
        out = out[:, :S, :]
    return out


def reference(token_input_ids, token_table, posit_table):
    B, S = token_input_ids.shape
    tok = token_table[token_input_ids]                 # (B, S, E)
    pos = posit_table[jnp.arange(S)][None, :, :]       # (1, S, E)
    return tok + pos


if __name__ == "__main__":
    vocab_size = 64
    max_seq_length = 16
    B, S = 2, 8

    key = jax.random.PRNGKey(0)
    k_tok, k_pos, k_ids = jax.random.split(key, 3)

    # nn.Embedding default init: N(0, 1)
    token_table = jax.random.normal(k_tok, (vocab_size, EMBEDDING_DIM),
                                    dtype=jnp.float32)
    posit_table = jax.random.normal(k_pos, (max_seq_length, EMBEDDING_DIM),
                                    dtype=jnp.float32)
    token_input_ids = jax.random.randint(k_ids, (B, S), 0, vocab_size,
                                         dtype=jnp.int32)

    out = input_embedding(token_input_ids, token_table, posit_table)
    out = jax.block_until_ready(out)

    ref = reference(token_input_ids, token_table, posit_table)
    assert out.shape == (B, S, EMBEDDING_DIM)
    assert jnp.allclose(out, ref, atol=1e-6), "mismatch vs reference"

    print("KERNEL_OK")
</pallas_src>

<mosaic_0001>
module attributes {stable_mosaic.version = 11 : i64} {
  func.func @_embed_gather_kernel(%arg0: i32, %arg1: i32, %arg2: memref<16xi32, #tpu.memory_space<smem>>, %arg3: memref<8x128xf32, #tpu.memory_space<vmem>>, %arg4: memref<64x128xf32, #tpu.memory_space<any>>, %arg5: memref<1x8x128xf32, #tpu.memory_space<vmem>>, %arg6: memref<8x128xf32, #tpu.memory_space<vmem>>, %arg7: memref<8x!tpu.dma_semaphore, #tpu.memory_space<semaphore_mem>>) attributes {dimension_semantics = [#tpu.dimension_semantics<parallel>, #tpu.dimension_semantics<parallel>], iteration_bounds = array<i64: 2, 1>, scalar_prefetch = 1 : i64, scratch_operands = 2 : i64, tpu.core_type = #tpu.core_type<tc>, window_params = [{transform_indices = @transform_0, window_bounds = array<i64: 8, 128>}, {}, {transform_indices = @transform_2, window_bounds = array<i64: 1, 8, 128>}]} {
    %c1_i32 = arith.constant 1 : i32
    %0 = arith.muli %arg0, %c1_i32 : i32
    %1 = arith.addi %0, %arg1 : i32
    %c8_i32 = arith.constant 8 : i32
    %2 = arith.muli %1, %c8_i32 : i32
    %c0_i32 = arith.constant 0 : i32
    %c8_i32_0 = arith.constant 8 : i32
    %3 = arith.addi %c0_i32, %c8_i32_0 : i32
    %c1_i32_1 = arith.constant 1 : i32
    scf.for %arg8 = %c0_i32 to %3 step %c1_i32_1  : i32 {
      %c1_i32_13 = arith.constant 1 : i32
      %10 = arith.muli %arg8, %c1_i32_13 : i32
      %c0_i32_14 = arith.constant 0 : i32
      %11 = arith.addi %c0_i32_14, %10 : i32
      %12 = arith.addi %2, %11 : i32
      %13 = arith.index_cast %12 : i32 to index
      %14 = memref.load %arg2[%13] : memref<16xi32, #tpu.memory_space<smem>>
      %c0_i32_15 = arith.constant 0 : i32
      %c63_i32 = arith.constant 63 : i32
      %15 = arith.maxsi %c0_i32_15, %14 : i32
      %16 = arith.minsi %c63_i32, %15 : i32
      %c0_i32_16 = arith.constant 0 : i32
      %17 = tpu.memref_slice %arg4[%16, %c0_i32_16] : memref<64x128xf32, #tpu.memory_space<any>> -> memref<1x128xf32, #tpu.memory_space<any>>
      %c0_i32_17 = arith.constant 0 : i32
      %18 = tpu.memref_slice %arg6[%11, %c0_i32_17] : memref<8x128xf32, #tpu.memory_space<vmem>> -> memref<1x128xf32, #tpu.memory_space<vmem>>
      %19 = tpu.memref_slice %arg7[%11] : memref<8x!tpu.dma_semaphore, #tpu.memory_space<semaphore_mem>> -> memref<1x!tpu.dma_semaphore, #tpu.memory_space<semaphore_mem>>
      %20 = tpu.memref_squeeze %19 : memref<1x!tpu.dma_semaphore, #tpu.memory_space<semaphore_mem>> -> memref<!tpu.dma_semaphore, #tpu.memory_space<semaphore_mem>>
      tpu.enqueue_dma source(%17 : memref<1x128xf32, #tpu.memory_space<any>>) target(%18 : memref<1x128xf32, #tpu.memory_space<vmem>>) target_semaphore(%20 : memref<!tpu.dma_semaphore, #tpu.memory_space<semaphore_mem>>)
    }
    %c8_i32_2 = arith.constant 8 : i32
    %c0_i32_3 = arith.constant 0 : i32
    %c8_i32_4 = arith.constant 8 : i32
    %4 = arith.addi %c0_i32_3, %c8_i32_4 : i32
    %c1_i32_5 = arith.constant 1 : i32
    scf.for %arg8 = %c0_i32_3 to %4 step %c1_i32_5  : i32 {
      %c1_i32_13 = arith.constant 1 : i32
      %10 = arith.muli %arg8, %c1_i32_13 : i32
      %c0_i32_14 = arith.constant 0 : i32
      %11 = arith.addi %c0_i32_14, %10 : i32
      %c0_i32_15 = arith.constant 0 : i32
      %c0_i32_16 = arith.constant 0 : i32
      %12 = tpu.memref_slice %arg4[%c0_i32_15, %c0_i32_16] : memref<64x128xf32, #tpu.memory_space<any>> -> memref<1x128xf32, #tpu.memory_space<any>>
      %c0_i32_17 = arith.constant 0 : i32
      %13 = tpu.memref_slice %arg6[%11, %c0_i32_17] : memref<8x128xf32, #tpu.memory_space<vmem>> -> memref<1x128xf32, #tpu.memory_space<vmem>>
      %14 = tpu.memref_slice %arg7[%11] : memref<8x!tpu.dma_semaphore, #tpu.memory_space<semaphore_mem>> -> memref<1x!tpu.dma_semaphore, #tpu.memory_space<semaphore_mem>>
      %15 = tpu.memref_squeeze %14 : memref<1x!tpu.dma_semaphore, #tpu.memory_space<semaphore_mem>> -> memref<!tpu.dma_semaphore, #tpu.memory_space<semaphore_mem>>
      tpu.wait_dma2 semaphore(%15 : memref<!tpu.dma_semaphore, #tpu.memory_space<semaphore_mem>>) src(%12 : memref<1x128xf32, #tpu.memory_space<any>>) dst(%13 : memref<1x128xf32, #tpu.memory_space<vmem>>)
    }
    %c8_i32_6 = arith.constant 8 : i32
    %c0 = arith.constant 0 : index
    %c0_7 = arith.constant 0 : index
    %5 = vector.load %arg6[%c0, %c0_7] : memref<8x128xf32, #tpu.memory_space<vmem>>, vector<8x128xf32>
    %c0_8 = arith.constant 0 : index
    %c0_9 = arith.constant 0 : index
    %6 = vector.load %arg3[%c0_8, %c0_9] : memref<8x128xf32, #tpu.memory_space<vmem>>, vector<8x128xf32>
    %7 = arith.addf %5, %6 : vector<8x128xf32>
    %8 = vector.shape_cast %7 : vector<8x128xf32> to vector<1x8x128xf32>
    %c0_10 = arith.constant 0 : index
    %c0_11 = arith.constant 0 : index
    %c0_12 = arith.constant 0 : index
    %9 = vector.load %arg5[%c0_10, %c0_11, %c0_12] : memref<1x8x128xf32, #tpu.memory_space<vmem>>, vector<1x8x128xf32>
    tpu.vector_store %arg5[%c0_10, %c0_11, %c0_12], %8 {strides = array<i32>} : memref<1x8x128xf32, #tpu.memory_space<vmem>>, vector<1x8x128xf32>,
    return
  }
  func.func @transform_0(%arg0: i32, %arg1: i32, %arg2: memref<16xi32, #tpu.memory_space<smem>>) -> (i32, i32) {
    %c0_i32 = arith.constant 0 : i32
    %c0_i32_0 = arith.constant 0 : i32
    return %arg1, %c0_i32 : i32, i32
  }
  func.func @transform_2(%arg0: i32, %arg1: i32, %arg2: memref<16xi32, #tpu.memory_space<smem>>) -> (i32, i32, i32) {
    %c0_i32 = arith.constant 0 : i32
    %c0_i32_0 = arith.constant 0 : i32
    return %arg0, %arg1, %c0_i32 : i32, i32, i32
  }
}

</mosaic_0001>

<bundles_post_ra>
// kernel: tpu_custom_call.1
= control target key start
LH: loop header
LB: loop body
LE: loop exit
PB: predicated region body
PF: predicated region fallthrough
CT: control target
= control target key end

     0   :  { %s602_s12 = smov [#allocation5]   ;;  %s784_s0 = inlined_call_operand.hbm [shape: s32[16], index: 0, kind: input, shape index: {}]   ;;  %s785_s1 = inlined_call_operand.hbm [shape: f32[8,128], index: 1, kind: input, shape index: {}]   ;;  %s786_s2 = inlined_call_operand.hbm [shape: f32[64,128], index: 2, kind: input, shape index: {}]   ;;  %s787_s3 = inlined_call_operand.hbm [shape: f32[2,8,128], index: 3, kind: output, shape index: {}]  }
   0x1   :  { %9 = dma.hbm_to_smem %s784_s0, 16, %s602_s12, [#allocation4] }
   0x2   :  { %558 = dma.done.wait [#allocation4], 16 }
   0x3   :  { %559 = vsyncadd [#allocation4], 4294967280 }
   0x4   :  { %11 = sfence }
   0x5   :  { %12 = vsyncpa [#allocation7], 0 }
   0x6   :  { %13 = vsyncpa [#allocation8], 0 }
   0x7   :  { %15 = vsyncpa [#allocation8 + $0x1], 0  ;;  %s629_s15 = smov 0   ;;  %s631_s16 = smov 0  }
   0x8   :  { %s633_s17 = smov 0   ;;  %s635_s18 = smov 0  }
   0x9   :  { %s637_s19 = smov 0   ;;  %s639_s20 = smov 0  }
   0xa LB: > { %s333_s0 = sadd.s32 4294967295, %s592_s20   ;;  %s334_s21 = sadd.s32 4294967294, %s592_s20   ;;  %s592_s20 = sphi %s639_s20, %s21_s20   ;;  %s588_s19 = sphi %s637_s19, %s797_s19   ;;  %s584_s18 = sphi %s635_s18, %s796_s18   ;;  %s580_s17 = sphi %s633_s17, %s795_s17   ;;  %s576_s16 = sphi %s631_s16, %s794_s16   ;;  %s572_s15 = sphi %s629_s15, %s793_s15  }
   0xb   : > { %s33_s22 = sadd.s32 1, %s588_s19  ;;  %s68_s23 = sadd.s32 1, %s580_s17 }
   0xc   : > { %p35_p0 = scmp.ge.s32.totalorder %s33_s22, 2  ;;  %p78_p1 = scmp.ne.s32.totalorder %s580_s17, %s576_s16 }
   0xd   : > { %p79_p2 = scmp.eq.s32.totalorder %s333_s0, 1  ;;  %p84_p3 = scmp.ne.s32.totalorder %s576_s16, %s572_s15 }
   0xe   : > { %s799_s22 = smov (%p35_p0, %s33_s22), 0  ;;  %p85_p5 = scmp.eq.s32.totalorder %s334_s21, 1 }
   0xf   : > { %p669_p4 = por %p79_p2, %p78_p1  ;;  %s63_s25 = ssub.s32 %s588_s19, %s799_s22 }
  0x10   : > { %p335_p6 = scmp.ge.s32.totalorder %s592_s20, 1  ;;  %p66_p7 = scmp.eq.s32.totalorder %s63_s25, 0 }
  0x11   : > { %p676_p8 = por %p85_p5, %p84_p3  ;;  %p92_p9 = scmp.lt.s32.totalorder %s592_s20, 3 }
  0x12   : > { %s682_s27 = scalar_select %p66_p7, %s580_s17, %s68_s23  }
  0x13   : > { %p684_p10 = pnand %p335_p6, %p92_p9  ;;  %p688_p11 = scmp.eq.s32.totalorder %s333_s0, 0 }
  0x14   : > { %s603_s30 = smov [#allocation6]  }
  0x15   : > { %p367_p12 = pneg %p684_p10  ;;  %s107_s4 = sshll.u32 %s603_s30, 4  ;;  %s108_s4 = int_to_ptr.vmem [resolvable:$true] %s107_s4 }
  0x16   : > { %s463_s5 = scalar_lea.vmem %s108_s4, 128  ;;  %p471_p5 = scmp.lt.s32.totalorder %s108_s4, %s108_s4 }
  0x17   : > { %p368_p13 = pnand %p688_p11, %p367_p12  ;;  %p464_p1 = scmp.ne.s32.totalorder %s108_s4, %s463_s5 }
  0x18   : > { %p472_p6 = scmp.lt.s32.totalorder %s463_s5, %s463_s5 }
  0x19   : > { %p454_p0 = pneg %p368_p13 }
  0x1a   : > { %p473_p7 = por %p472_p6, %p471_p5 }
  0x1b   : > { %p466_p2 = pnand %p464_p1, %p454_p0 }
  0x1d   : > { %p467_p3 = pneg %p466_p2 }
  0x1f   : > { %p474_p9 = pnand %p473_p7, %p467_p3 }
  0x21   : > { %477 = shalt.err (!%p474_p9)
}
  0x22   : > { %370 = dma.hbm_to_vmem [thread:$0]  (!%p368_p13), %s785_s1, 128, %s108_s4, [#allocation7]  }
  0x23   : > { %120 = sbr.rel (%p684_p10) target bundleno = 113 (0x71), region = 24 }
  0x28   : > { %561 = dma.done.wait (%p688_p11), [#allocation7], 128  }
  0x29   : > { %563 = vsyncadd (%p688_p11), [#allocation7], 4294967168  ;;  %s132_s8 = sand.u32 1, %s576_s16   ;;  %s712_s12 = smov 0  }
  0x2a   : > { %s709_s10 = sshll.u32 %s132_s8, 3 }
  0x2b   : > { %s134_s11 = scalar_lea.vmem [#allocation9], %s709_s10 }
  0x2c LB: >> { %s792_s9 = sshll.u32 %s584_s18, 3  ;;  %s151_s0 = scalar_lea.vmem [#allocation2], %s596_s12  ;;  %s596_s12 = sphi %s712_s12, %s142_s12  }
  0x2d   : >> { %s143_s13 = sadd.s32 %s596_s12, %s792_s9  ;;  %s160_s21 = sshll.u32 %s151_s0, 4  ;;  %s161_s21 = int_to_ptr.vmem [resolvable:$true] %s160_s21 }
  0x2e   : >> { %s144_s14 = sld [smem:[#allocation5 + %s143_s13]]  ;;  %s152_s30 = scalar_lea.sflag [#allocation3], %s596_s12 }
  0x2f   : >> { %s480_s7 = scalar_lea.hbm %s786_s2, 1024 }
  0x34   : >> { %p145_p10 = scmp.gt.s32.totalorder %s144_s14, 0  ;;  %p341_p11 = scmp.lt.s32.totalorder %s144_s14, 63 }
  0x36   : >> { %s801_s14 = smov (!%p145_p10, %s144_s14), 0 }
  0x37   : >> { %s803_s14 = smov (!%p341_p11, %s801_s14), 63 }
  0x38   : >> { %s346_s23 = sshll.u32 %s803_s14, 4 }
  0x39   : >> { %s150_s29 = scalar_lea.hbm %s786_s2, %s346_s23 }
  0x3a   : >> { %s478_s4 = scalar_lea.hbm %s150_s29, 16  ;;  %p481_p13 = scmp.lt.s32.totalorder %s150_s29, %s786_s2 }
  0x3b   : >> { %p479_p12 = scmp.ne.s32.totalorder %s150_s29, %s478_s4  ;;  %p482_p0 = scmp.lt.s32.totalorder %s480_s7, %s478_s4 }
  0x3d   : >> { %p483_p1 = por %p482_p0, %p481_p13 }
  0x3f   : >> { %p484_p2 = pnand %p483_p1, %p479_p12 }
  0x41   : >> { %487 = shalt.err (!%p484_p2)  }
  0x42   : >> { %s488_s14 = scalar_lea.vmem %s161_s21, 16  ;;  %s604_s0 = smov [#allocation2]  }
  0x43   : >> { %p489_p3 = scmp.ne.s32.totalorder %s161_s21, %s488_s14  ;;  %s490_s25 = sshll.u32 %s604_s0, 4  ;;  %s491_s25 = int_to_ptr.vmem [resolvable:$false] %s490_s25 }
  0x44   : >> { %s492_s23 = scalar_lea.vmem %s491_s25, 128  ;;  %p493_p5 = scmp.lt.s32.totalorder %s161_s21, %s491_s25 }
  0x45   : >> { %p494_p6 = scmp.lt.s32.totalorder %s492_s23, %s488_s14 }
  0x47   : >> { %p495_p7 = por %p494_p6, %p493_p5 }
  0x49   : >> { %p496_p9 = pnand %p495_p7, %p489_p3 }
  0x4b   : >> { %499 = shalt.err (!%p496_p9)  }
  0x4c   : >> { %163 = dma.hbm_to_vmem [thread:$0]  %s150_s29, 16, %s161_s21, %s152_s30 }
  0x4d   : >> { %s142_s12 = sadd.s32 1, %s596_s12  }
  0x4e   : >> { %p139_p10 = scmp.ge.s32.totalorder %s142_s12, 8  }
  0x4f   : > { %s598_s9 = smov (%p139_p10), 0  }
  0x50   : > { %141 = sbr.rel (!%p139_p10) target bundleno = 44 (0x2c), region = 91 }
  0x55 LB: >> { %s170_s28 = scalar_lea.sflag [#allocation3], %s600_s9  ;;  %s600_s9 = sphi %s598_s9, %s169_s9  }
  0x56   : >> { %564 = dma.done.wait %s170_s28, 16 }
  0x57   : >> { %565 = vsyncadd %s170_s28, 4294967280  ;;  %s169_s9 = sadd.s32 1, %s600_s9  }
  0x58   : >> { %p166_p11 = scmp.ge.s32.totalorder %s169_s9, 8  }
  0x59   : > { %v174_v0 = vld [vmem:[#allocation2] sm:$0xff] (%p166_p11)  ;;  %v175_v1 = vld [vmem:[#allocation6] sm:$0xff] (%p166_p11)  ;;  %s348_s12 = sshll.u32 (%p166_p11), %s584_s18, 7  ;;  %s193_s4 = sshll.u32 (%p166_p11), %s134_s11, 4  ;;  %s194_s4 = int_to_ptr.vmem [resolvable:$true] %s193_s4 }
  0x5a   : > { %168 = sbr.rel (!%p166_p11) target bundleno = 85 (0x55), region = 102  ;;  %v176_v2 = vadd.f32 (%p166_p11), %v175_v1, %v174_v0  ;;  %s738_s30 = scalar_lea.hbm (%p166_p11), %s787_s3, %s348_s12 }
  0x5b   : > { %s179_s5 = scalar_lea.sflag (%p166_p11), [#allocation8], %s132_s8  ;;  %s500_s6 = scalar_lea.vmem (%p166_p11), %s194_s4, 128 }
  0x5c   : > { %177 = vst [vmem:[%s134_s11] sm:$0xff] (%p166_p11), %v176_v2  ;;  %p501_p12 = scmp.ne.s32.totalorder (%p166_p11), %s194_s4, %s500_s6  ;;  %s605_s7 = smov (%p166_p11), [#allocation9]  }
  0x5d   : > { %s504_s18 = sshll.u32 (%p166_p11), %s605_s7, 4  ;;  %s505_s18 = int_to_ptr.vmem [resolvable:$false] %s504_s18 }
  0x5e   : > { %p502_p13 = pnand (%p166_p11), %p501_p12, %p669_p4  ;;  %s506_s13 = scalar_lea.vmem (%p166_p11), %s505_s18, 256 }
  0x5f   : > { %p507_p1 = scmp.lt.s32.totalorder %s194_s4, %s505_s18  ;;  %p508_p2 = scmp.lt.s32.totalorder %s506_s13, %s500_s6 }
  0x60   : > { %p503_p0 = pneg %p502_p13 }
  0x61   : > { %p509_p3 = por %p508_p2, %p507_p1 }
  0x63   : > { %p510_p5 = pnand %p509_p3, %p503_p0 }
  0x65   : > { %513 = shalt.err (!%p510_p5)
}
  0x66   : > { %s514_s10 = scalar_lea.hbm %s738_s30, 128  ;;  %s518_s14 = scalar_lea.hbm %s787_s3, 256 }
  0x67   : > { %p515_p6 = scmp.ne.s32.totalorder %s738_s30, %s514_s10  ;;  %p519_p10 = scmp.lt.s32.totalorder %s738_s30, %s787_s3 }
  0x68   : > { %p520_p11 = scmp.lt.s32.totalorder %s518_s14, %s514_s10 }
  0x69   : > { %p516_p7 = pnand %p515_p6, %p669_p4 }
  0x6a   : > { %p521_p12 = por %p520_p11, %p519_p10 }
  0x6b   : > { %p517_p9 = pneg %p516_p7 }
  0x6d   : > { %p522_p13 = pnand %p521_p12, %p517_p9 }
  0x6f   : > { %525 = shalt.err (!%p522_p13)
}
  0x70   : > { %365 = dma.vmem_to_hbm [thread:$0]  (%p669_p4), %s194_s4, 128, %s738_s30, %s179_s5  }
  0x71 PF: > { %p377_p0 = scmp.ge.s32.totalorder %s592_s20, 2  ;;  %s205_s23 = sand.u32 1, %s572_s15  }
  0x72   : > { %s206_s9 = scalar_lea.sflag [#allocation8], %s205_s23 }
  0x73   : > { %p372_p1 = pnand %p377_p0, %p676_p8 }
  0x75   : > { %p373_p2 = pneg %p372_p1 }
  0x77   : > { %567 = dma.done.wait (%p373_p2), %s206_s9, 128  }
  0x78   : > { %569 = vsyncadd (%p373_p2), %s206_s9, 4294967168  ;;  %s21_s20 = sadd.s32 1, %s592_s20   ;;  %s793_s15 = smov %s576_s16 }
  0x79   : > { %p18_p3 = scmp.ge.s32.totalorder %s21_s20, 4   ;;  %s794_s16 = smov %s580_s17 }
  0x7a   : > { %s795_s17 = smov %s682_s27  ;;  %s796_s18 = smov %s588_s19 }
  0x7b   : > { %s797_s19 = smov %s799_s22  ;;  %20 = sbr.rel (!%p18_p3) target bundleno = 10 (0xa), region = 113 }
  0x80   :  { %211 = vsyncpa [#allocation7], 1 }
  0x81   :  { %213 = vsyncpa [#allocation7 + $0x1], 1 }
  0x82   :  { %214 = vsyncpa [#allocation8], 1 }
  0x83   :  { %216 = vsyncpa [#allocation8 + $0x1], 1 }
  0x84   :  { %217 = vsyncmov [#allocation3] }
  0x87   :  { %s218_s24 = vpop.sfrf %217 }
  0x88   :  { %p351_p4 = scmp.ne.s32.totalorder %s218_s24, 0 }
  0x8a   :  { %222 = shalt.err (%p351_p4)  }
  0x8b   :  { %224 = vsyncmov [#allocation3 + $0x1] }
  0x8e   :  { %s225_s26 = vpop.sfrf %224 }
  0x8f   :  { %p352_p8 = scmp.ne.s32.totalorder %s225_s26, 0 }
  0x91   :  { %229 = shalt.err (%p352_p8)  }
  0x92   :  { %231 = vsyncmov [#allocation3 + $0x2] }
  0x95   :  { %s232_s27 = vpop.sfrf %231 }
  0x96   :  { %p353_p5 = scmp.ne.s32.totalorder %s232_s27, 0 }
  0x98   :  { %236 = shalt.err (%p353_p5)  }
  0x99   :  { %238 = vsyncmov [#allocation3 + $0x3] }
  0x9c   :  { %s239_s22 = vpop.sfrf %238 }
  0x9d   :  { %p354_p6 = scmp.ne.s32.totalorder %s239_s22, 0 }
  0x9f   :  { %243 = shalt.err (%p354_p6)  }
  0xa0   :  { %245 = vsyncmov [#allocation3 + $0x4] }
  0xa3   :  { %s246_s1 = vpop.sfrf %245 }
  0xa4   :  { %p355_p7 = scmp.ne.s32.totalorder %s246_s1, 0 }
  0xa6   :  { %250 = shalt.err (%p355_p7)  }
  0xa7   :  { %252 = vsyncmov [#allocation3 + $0x5] }
  0xaa   :  { %s253_s2 = vpop.sfrf %252 }
  0xab   :  { %p356_p9 = scmp.ne.s32.totalorder %s253_s2, 0 }
  0xad   :  { %257 = shalt.err (%p356_p9)  }
  0xae   :  { %259 = vsyncmov [#allocation3 + $0x6] }
  0xb1   :  { %s260_s3 = vpop.sfrf %259 }
  0xb2   :  { %p357_p10 = scmp.ne.s32.totalorder %s260_s3, 0 }
  0xb4   :  { %264 = shalt.err (%p357_p10)  }
  0xb5   :  { %266 = vsyncmov [#allocation3 + $0x7] }
  0xb8   :  { %s267_s15 = vpop.sfrf %266 }
  0xb9   :  { %p358_p11 = scmp.ne.s32.totalorder %s267_s15, 0 }
  0xbb   :  { %271 = shalt.err (%p358_p11)  }

</bundles_post_ra>
